<compile_context>
chip_gen: v6e
topology: v6e:2x2x1
jax: 0.10.0
libtpu: 0.0.40
codegen_flags: <defaults>
</compile_context>

<pallas_src>
import functools

import jax
import jax.numpy as jnp
from jax.experimental import pallas as pl
from jax.experimental.pallas import tpu as pltpu

# ---------------- module hyper-parameters (match PyTorch defaults) -------------
NUM_OBJECTIVES = 1
INPUT_FEAT_LEN = 128
NUM_LAYERS = 10
WIDTH = 20

LANE = 128
SUBLANE = 8


def _pad_to(n, m):
    return ((n + m - 1) // m) * m


WIDTH_PAD = _pad_to(WIDTH, LANE)          # 128
IN_PAD = _pad_to(INPUT_FEAT_LEN, LANE)    # 128
OUT_PAD = _pad_to(NUM_OBJECTIVES, LANE)   # 128
NUM_HIDDEN_REPEAT = NUM_LAYERS - 2        # 8 hidden (width -> width) linears

# Default batch tile (rows per grid step).  Double-buffered f32 x block
# (2 * TB * 128 * 4B = 0.5 MiB at TB=512) plus ~0.35 MiB of resident bf16
# weights stays far below even v5e's 16 MiB scoped-VMEM default and v7x's
# 64 MiB physical VMEM, while being large enough to amortize per-step overhead.
DEFAULT_TB = 512

# TODO(synk): recover the 20/128 lane-padding waste by packing ~6 ensemble
# members block-diagonally into each 128x128 weight tile (or batching several
# FFEnsembleMember instances through one pallas_call).


# --------------------------------- kernel -------------------------------------
def _mlp_kernel(x_ref, w0_ref, b0_ref, wh_ref, bh_ref, wo_ref, bo_ref, o_ref,
                *, num_hidden_repeat):
    # First linear (input_feat_len -> width) + ReLU.  bf16 MXU, f32 accumulate.
    h = jnp.dot(x_ref[...].astype(jnp.bfloat16), w0_ref[...],
                preferred_element_type=jnp.float32)
    h = jnp.maximum(h + b0_ref[...], 0.0)

    # Hidden linears (width -> width) + ReLU. Small fixed trip count -> unrolled.
    for l in range(num_hidden_repeat):
        h = jnp.dot(h.astype(jnp.bfloat16), wh_ref[l],
                    preferred_element_type=jnp.float32)
        h = jnp.maximum(h + bh_ref[l], 0.0)

    # Output linear (width -> num_objectives), no activation.
    out = jnp.dot(h.astype(jnp.bfloat16), wo_ref[...],
                  preferred_element_type=jnp.float32)
    out = out + bo_ref[...]
    # Only the first NUM_OBJECTIVES lanes carry real data -> write just those.
    o_ref[...] = out[:, :NUM_OBJECTIVES].astype(o_ref.dtype)


def ff_ensemble_member_forward(x, params, *, tb=DEFAULT_TB):
    """x: [B, INPUT_FEAT_LEN] float32. Returns [B, NUM_OBJECTIVES] float32."""
    B = x.shape[0]
    assert x.shape[1] == INPUT_FEAT_LEN == IN_PAD  # no input padding pass needed

    w0, b0, wh, bh, wo, bo = params

    tb = min(tb, _pad_to(B, SUBLANE))
    grid = (pl.cdiv(B, tb),)

    resident2 = lambda i: (0, 0)        # weights/biases: same block every step
    resident3 = lambda i: (0, 0, 0)

    return pl.pallas_call(
        functools.partial(_mlp_kernel, num_hidden_repeat=NUM_HIDDEN_REPEAT),
        out_shape=jax.ShapeDtypeStruct((B, NUM_OBJECTIVES), jnp.float32),
        grid=grid,
        in_specs=[
            pl.BlockSpec((tb, IN_PAD), lambda i: (i, 0)),                        # x (streamed)
            pl.BlockSpec((IN_PAD, WIDTH_PAD), resident2),                        # w0
            pl.BlockSpec((1, WIDTH_PAD), resident2),                             # b0
            pl.BlockSpec((NUM_HIDDEN_REPEAT, WIDTH_PAD, WIDTH_PAD), resident3),  # wh
            pl.BlockSpec((NUM_HIDDEN_REPEAT, 1, WIDTH_PAD), resident3),          # bh
            pl.BlockSpec((WIDTH_PAD, OUT_PAD), resident2),                       # wo
            pl.BlockSpec((1, OUT_PAD), resident2),                               # bo
        ],
        out_specs=pl.BlockSpec((tb, NUM_OBJECTIVES), lambda i: (i, 0)),
        compiler_params=pltpu.CompilerParams(
            dimension_semantics=("parallel",)),
    )(x, w0, b0, wh, bh, wo, bo)


# ------------------------- deterministic parameter init ------------------------
def init_params(key):
    """Mimics nn.Linear's uniform(-1/sqrt(fan_in), 1/sqrt(fan_in)) init,
    stored transposed ([in, out]), zero-padded to lane-aligned shapes,
    weights in bf16 (MXU dtype), biases in f32."""
    ks = jax.random.split(key, 4 + 2 * NUM_HIDDEN_REPEAT)

    def linear(kw, kb, fan_in, fan_out, in_pad, out_pad):
        bound = 1.0 / jnp.sqrt(jnp.float32(fan_in))
        w = jax.random.uniform(kw, (fan_in, fan_out), jnp.float32, -bound, bound)
        b = jax.random.uniform(kb, (fan_out,), jnp.float32, -bound, bound)
        w_p = jnp.zeros((in_pad, out_pad), jnp.float32).at[:fan_in, :fan_out].set(w)
        b_p = jnp.zeros((1, out_pad), jnp.float32).at[0, :fan_out].set(b)
        return w_p.astype(jnp.bfloat16), b_p

    # first linear: input_feat_len -> width
    w0, b0 = linear(ks[0], ks[1], INPUT_FEAT_LEN, WIDTH, IN_PAD, WIDTH_PAD)

    # hidden linears: width -> width (stacked)
    whs, bhs = [], []
    for i in range(NUM_HIDDEN_REPEAT):
        w, b = linear(ks[2 + 2 * i], ks[3 + 2 * i], WIDTH, WIDTH, WIDTH_PAD, WIDTH_PAD)
        whs.append(w)
        bhs.append(b)
    wh = jnp.stack(whs, axis=0)            # [L-2, WIDTH_PAD, WIDTH_PAD] bf16
    bh = jnp.stack(bhs, axis=0)            # [L-2, 1, WIDTH_PAD] f32

    # output linear: width -> num_objectives
    wo, bo = linear(ks[-2], ks[-1], WIDTH, NUM_OBJECTIVES, WIDTH_PAD, OUT_PAD)

    return (w0, b0, wh, bh, wo, bo)


# ------------------------------ pure-JAX reference ------------------------------
def reference_forward(x, params):
    """f32 reference using the same (bf16-quantized) weights the kernel sees."""
    w0, b0, wh, bh, wo, bo = params
    w0 = w0.astype(jnp.float32)
    wh = wh.astype(jnp.float32)
    wo = wo.astype(jnp.float32)
    h = jnp.maximum(x @ w0[:INPUT_FEAT_LEN, :WIDTH] + b0[0, :WIDTH], 0.0)
    for l in range(NUM_HIDDEN_REPEAT):
        h = jnp.maximum(h @ wh[l, :WIDTH, :WIDTH] + bh[l, 0, :WIDTH], 0.0)
    return h @ wo[:WIDTH, :NUM_OBJECTIVES] + bo[0, :NUM_OBJECTIVES]


if __name__ == "__main__":
    key = jax.random.PRNGKey(0)
    k_param, k_x = jax.random.split(key)

    params = init_params(k_param)
    B = 8
    x = jax.random.normal(k_x, (B, INPUT_FEAT_LEN), jnp.float32)

    y = ff_ensemble_member_forward(x, params)
    y = jax.block_until_ready(y)

    y_ref = reference_forward(x, params)
    assert y.shape == (B, NUM_OBJECTIVES)
    # bf16 matmuls (f32 accumulate) -> looser tolerance than the pure-f32 path.
    assert jnp.allclose(y, y_ref, atol=5e-2, rtol=5e-2), "mismatch vs reference"

    print("KERNEL_OK")
</pallas_src>

<mosaic_0001>
module attributes {stable_mosaic.version = 11 : i64} {
  func.func @_mlp_kernel(%arg0: i32, %arg1: memref<8x128xf32, #tpu.memory_space<vmem>>, %arg2: memref<128x128xbf16, #tpu.memory_space<vmem>>, %arg3: memref<1x128xf32, #tpu.memory_space<vmem>>, %arg4: memref<8x128x128xbf16, #tpu.memory_space<vmem>>, %arg5: memref<8x1x128xf32, #tpu.memory_space<vmem>>, %arg6: memref<128x128xbf16, #tpu.memory_space<vmem>>, %arg7: memref<1x128xf32, #tpu.memory_space<vmem>>, %arg8: memref<8x1xf32, #tpu.memory_space<vmem>>) attributes {dimension_semantics = [#tpu.dimension_semantics<parallel>], iteration_bounds = array<i64: 1>, scalar_prefetch = 0 : i64, scratch_operands = 0 : i64, tpu.core_type = #tpu.core_type<tc>, window_params = [{transform_indices = @transform_0, window_bounds = array<i64: 8, 128>}, {pipeline_mode = #tpu.pipeline_mode<synchronous>, transform_indices = @transform_1, window_bounds = array<i64: 128, 128>}, {pipeline_mode = #tpu.pipeline_mode<synchronous>, transform_indices = @transform_2, window_bounds = array<i64: 1, 128>}, {pipeline_mode = #tpu.pipeline_mode<synchronous>, transform_indices = @transform_3, window_bounds = array<i64: 8, 128, 128>}, {pipeline_mode = #tpu.pipeline_mode<synchronous>, transform_indices = @transform_4, window_bounds = array<i64: 8, 1, 128>}, {pipeline_mode = #tpu.pipeline_mode<synchronous>, transform_indices = @transform_5, window_bounds = array<i64: 128, 128>}, {pipeline_mode = #tpu.pipeline_mode<synchronous>, transform_indices = @transform_6, window_bounds = array<i64: 1, 128>}, {transform_indices = @transform_7, window_bounds = array<i64: 8, 1>}]} {
    %c0 = arith.constant 0 : index
    %c0_0 = arith.constant 0 : index
    %0 = vector.load %arg1[%c0, %c0_0] : memref<8x128xf32, #tpu.memory_space<vmem>>, vector<8x128xf32>
    %1 = arith.truncf %0 : vector<8x128xf32> to vector<8x128xbf16>
    %c0_1 = arith.constant 0 : index
    %c0_2 = arith.constant 0 : index
    %2 = vector.load %arg2[%c0_1, %c0_2] : memref<128x128xbf16, #tpu.memory_space<vmem>>, vector<128x128xbf16>
    %cst = arith.constant dense<0.000000e+00> : vector<8x128xf32>
    %3 = tpu.matmul %1, %2, %cst {dimension_numbers = #tpu.dot_dimension_numbers<[1], [0], [0], [1], [0, 0, 1, 1], [], []>} : vector<8x128xbf16>, vector<128x128xbf16>, vector<8x128xf32> -> vector<8x128xf32>
    %c0_3 = arith.constant 0 : index
    %c0_4 = arith.constant 0 : index
    %4 = vector.load %arg3[%c0_3, %c0_4] : memref<1x128xf32, #tpu.memory_space<vmem>>, vector<1x128xf32>
    %5 = vector.broadcast %4 : vector<1x128xf32> to vector<8x128xf32>
    %6 = arith.addf %3, %5 : vector<8x128xf32>
    %cst_5 = arith.constant 0.000000e+00 : f32
    %7 = vector.broadcast %cst_5 : f32 to vector<8x128xf32>
    %8 = arith.maximumf %6, %7 : vector<8x128xf32>
    %9 = arith.truncf %8 : vector<8x128xf32> to vector<8x128xbf16>
    %c0_6 = arith.constant 0 : index
    %c0_7 = arith.constant 0 : index
    %c0_8 = arith.constant 0 : index
    %10 = vector.load %arg4[%c0_6, %c0_7, %c0_8] : memref<8x128x128xbf16, #tpu.memory_space<vmem>>, vector<1x128x128xbf16>
    %11 = vector.shape_cast %10 : vector<1x128x128xbf16> to vector<128x128xbf16>
    %cst_9 = arith.constant dense<0.000000e+00> : vector<8x128xf32>
    %12 = tpu.matmul %9, %11, %cst_9 {dimension_numbers = #tpu.dot_dimension_numbers<[1], [0], [0], [1], [0, 0, 1, 1], [], []>} : vector<8x128xbf16>, vector<128x128xbf16>, vector<8x128xf32> -> vector<8x128xf32>
    %c0_10 = arith.constant 0 : index
    %c0_11 = arith.constant 0 : index
    %c0_12 = arith.constant 0 : index
    %13 = vector.load %arg5[%c0_10, %c0_11, %c0_12] : memref<8x1x128xf32, #tpu.memory_space<vmem>>, vector<1x1x128xf32>
    %14 = vector.shape_cast %13 : vector<1x1x128xf32> to vector<1x128xf32>
    %15 = vector.broadcast %14 : vector<1x128xf32> to vector<8x128xf32>
    %16 = arith.addf %12, %15 : vector<8x128xf32>
    %cst_13 = arith.constant 0.000000e+00 : f32
    %17 = vector.broadcast %cst_13 : f32 to vector<8x128xf32>
    %18 = arith.maximumf %16, %17 : vector<8x128xf32>
    %19 = arith.truncf %18 : vector<8x128xf32> to vector<8x128xbf16>
    %c1 = arith.constant 1 : index
    %c0_14 = arith.constant 0 : index
    %c0_15 = arith.constant 0 : index
    %20 = vector.load %arg4[%c1, %c0_14, %c0_15] : memref<8x128x128xbf16, #tpu.memory_space<vmem>>, vector<1x128x128xbf16>
    %21 = vector.shape_cast %20 : vector<1x128x128xbf16> to vector<128x128xbf16>
    %cst_16 = arith.constant dense<0.000000e+00> : vector<8x128xf32>
    %22 = tpu.matmul %19, %21, %cst_16 {dimension_numbers = #tpu.dot_dimension_numbers<[1], [0], [0], [1], [0, 0, 1, 1], [], []>} : vector<8x128xbf16>, vector<128x128xbf16>, vector<8x128xf32> -> vector<8x128xf32>
    %c1_17 = arith.constant 1 : index
    %c0_18 = arith.constant 0 : index
    %c0_19 = arith.constant 0 : index
    %23 = vector.load %arg5[%c1_17, %c0_18, %c0_19] : memref<8x1x128xf32, #tpu.memory_space<vmem>>, vector<1x1x128xf32>
    %24 = vector.shape_cast %23 : vector<1x1x128xf32> to vector<1x128xf32>
    %25 = vector.broadcast %24 : vector<1x128xf32> to vector<8x128xf32>
    %26 = arith.addf %22, %25 : vector<8x128xf32>
    %cst_20 = arith.constant 0.000000e+00 : f32
    %27 = vector.broadcast %cst_20 : f32 to vector<8x128xf32>
    %28 = arith.maximumf %26, %27 : vector<8x128xf32>
    %29 = arith.truncf %28 : vector<8x128xf32> to vector<8x128xbf16>
    %c2 = arith.constant 2 : index
    %c0_21 = arith.constant 0 : index
    %c0_22 = arith.constant 0 : index
    %30 = vector.load %arg4[%c2, %c0_21, %c0_22] : memref<8x128x128xbf16, #tpu.memory_space<vmem>>, vector<1x128x128xbf16>
    %31 = vector.shape_cast %30 : vector<1x128x128xbf16> to vector<128x128xbf16>
    %cst_23 = arith.constant dense<0.000000e+00> : vector<8x128xf32>
    %32 = tpu.matmul %29, %31, %cst_23 {dimension_numbers = #tpu.dot_dimension_numbers<[1], [0], [0], [1], [0, 0, 1, 1], [], []>} : vector<8x128xbf16>, vector<128x128xbf16>, vector<8x128xf32> -> vector<8x128xf32>
    %c2_24 = arith.constant 2 : index
    %c0_25 = arith.constant 0 : index
    %c0_26 = arith.constant 0 : index
    %33 = vector.load %arg5[%c2_24, %c0_25, %c0_26] : memref<8x1x128xf32, #tpu.memory_space<vmem>>, vector<1x1x128xf32>
    %34 = vector.shape_cast %33 : vector<1x1x128xf32> to vector<1x128xf32>
    %35 = vector.broadcast %34 : vector<1x128xf32> to vector<8x128xf32>
    %36 = arith.addf %32, %35 : vector<8x128xf32>
    %cst_27 = arith.constant 0.000000e+00 : f32
    %37 = vector.broadcast %cst_27 : f32 to vector<8x128xf32>
    %38 = arith.maximumf %36, %37 : vector<8x128xf32>
    %39 = arith.truncf %38 : vector<8x128xf32> to vector<8x128xbf16>
    %c3 = arith.constant 3 : index
    %c0_28 = arith.constant 0 : index
    %c0_29 = arith.constant 0 : index
    %40 = vector.load %arg4[%c3, %c0_28, %c0_29] : memref<8x128x128xbf16, #tpu.memory_space<vmem>>, vector<1x128x128xbf16>
    %41 = vector.shape_cast %40 : vector<1x128x128xbf16> to vector<128x128xbf16>
    %cst_30 = arith.constant dense<0.000000e+00> : vector<8x128xf32>
    %42 = tpu.matmul %39, %41, %cst_30 {dimension_numbers = #tpu.dot_dimension_numbers<[1], [0], [0], [1], [0, 0, 1, 1], [], []>} : vector<8x128xbf16>, vector<128x128xbf16>, vector<8x128xf32> -> vector<8x128xf32>
    %c3_31 = arith.constant 3 : index
    %c0_32 = arith.constant 0 : index
    %c0_33 = arith.constant 0 : index
    %43 = vector.load %arg5[%c3_31, %c0_32, %c0_33] : memref<8x1x128xf32, #tpu.memory_space<vmem>>, vector<1x1x128xf32>
    %44 = vector.shape_cast %43 : vector<1x1x128xf32> to vector<1x128xf32>
    %45 = vector.broadcast %44 : vector<1x128xf32> to vector<8x128xf32>
    %46 = arith.addf %42, %45 : vector<8x128xf32>
    %cst_34 = arith.constant 0.000000e+00 : f32
    %47 = vector.broadcast %cst_34 : f32 to vector<8x128xf32>
    %48 = arith.maximumf %46, %47 : vector<8x128xf32>
    %49 = arith.truncf %48 : vector<8x128xf32> to vector<8x128xbf16>
    %c4 = arith.constant 4 : index
    %c0_35 = arith.constant 0 : index
    %c0_36 = arith.constant 0 : index
    %50 = vector.load %arg4[%c4, %c0_35, %c0_36] : memref<8x128x128xbf16, #tpu.memory_space<vmem>>, vector<1x128x128xbf16>
    %51 = vector.shape_cast %50 : vector<1x128x128xbf16> to vector<128x128xbf16>
    %cst_37 = arith.constant dense<0.000000e+00> : vector<8x128xf32>
    %52 = tpu.matmul %49, %51, %cst_37 {dimension_numbers = #tpu.dot_dimension_numbers<[1], [0], [0], [1], [0, 0, 1, 1], [], []>} : vector<8x128xbf16>, vector<128x128xbf16>, vector<8x128xf32> -> vector<8x128xf32>
    %c4_38 = arith.constant 4 : index
    %c0_39 = arith.constant 0 : index
    %c0_40 = arith.constant 0 : index
    %53 = vector.load %arg5[%c4_38, %c0_39, %c0_40] : memref<8x1x128xf32, #tpu.memory_space<vmem>>, vector<1x1x128xf32>
    %54 = vector.shape_cast %53 : vector<1x1x128xf32> to vector<1x128xf32>
    %55 = vector.broadcast %54 : vector<1x128xf32> to vector<8x128xf32>
    %56 = arith.addf %52, %55 : vector<8x128xf32>
    %cst_41 = arith.constant 0.000000e+00 : f32
    %57 = vector.broadcast %cst_41 : f32 to vector<8x128xf32>
    %58 = arith.maximumf %56, %57 : vector<8x128xf32>
    %59 = arith.truncf %58 : vector<8x128xf32> to vector<8x128xbf16>
    %c5 = arith.constant 5 : index
    %c0_42 = arith.constant 0 : index
    %c0_43 = arith.constant 0 : index
    %60 = vector.load %arg4[%c5, %c0_42, %c0_43] : memref<8x128x128xbf16, #tpu.memory_space<vmem>>, vector<1x128x128xbf16>
    %61 = vector.shape_cast %60 : vector<1x128x128xbf16> to vector<128x128xbf16>
    %cst_44 = arith.constant dense<0.000000e+00> : vector<8x128xf32>
    %62 = tpu.matmul %59, %61, %cst_44 {dimension_numbers = #tpu.dot_dimension_numbers<[1], [0], [0], [1], [0, 0, 1, 1], [], []>} : vector<8x128xbf16>, vector<128x128xbf16>, vector<8x128xf32> -> vector<8x128xf32>
    %c5_45 = arith.constant 5 : index
    %c0_46 = arith.constant 0 : index
    %c0_47 = arith.constant 0 : index
    %63 = vector.load %arg5[%c5_45, %c0_46, %c0_47] : memref<8x1x128xf32, #tpu.memory_space<vmem>>, vector<1x1x128xf32>
    %64 = vector.shape_cast %63 : vector<1x1x128xf32> to vector<1x128xf32>
    %65 = vector.broadcast %64 : vector<1x128xf32> to vector<8x128xf32>
    %66 = arith.addf %62, %65 : vector<8x128xf32>
    %cst_48 = arith.constant 0.000000e+00 : f32
    %67 = vector.broadcast %cst_48 : f32 to vector<8x128xf32>
    %68 = arith.maximumf %66, %67 : vector<8x128xf32>
    %69 = arith.truncf %68 : vector<8x128xf32> to vector<8x128xbf16>
    %c6 = arith.constant 6 : index
    %c0_49 = arith.constant 0 : index
    %c0_50 = arith.constant 0 : index
    %70 = vector.load %arg4[%c6, %c0_49, %c0_50] : memref<8x128x128xbf16, #tpu.memory_space<vmem>>, vector<1x128x128xbf16>
    %71 = vector.shape_cast %70 : vector<1x128x128xbf16> to vector<128x128xbf16>
    %cst_51 = arith.constant dense<0.000000e+00> : vector<8x128xf32>
    %72 = tpu.matmul %69, %71, %cst_51 {dimension_numbers = #tpu.dot_dimension_numbers<[1], [0], [0], [1], [0, 0, 1, 1], [], []>} : vector<8x128xbf16>, vector<128x128xbf16>, vector<8x128xf32> -> vector<8x128xf32>
    %c6_52 = arith.constant 6 : index
    %c0_53 = arith.constant 0 : index
    %c0_54 = arith.constant 0 : index
    %73 = vector.load %arg5[%c6_52, %c0_53, %c0_54] : memref<8x1x128xf32, #tpu.memory_space<vmem>>, vector<1x1x128xf32>
    %74 = vector.shape_cast %73 : vector<1x1x128xf32> to vector<1x128xf32>
    %75 = vector.broadcast %74 : vector<1x128xf32> to vector<8x128xf32>
    %76 = arith.addf %72, %75 : vector<8x128xf32>
    %cst_55 = arith.constant 0.000000e+00 : f32
    %77 = vector.broadcast %cst_55 : f32 to vector<8x128xf32>
    %78 = arith.maximumf %76, %77 : vector<8x128xf32>
    %79 = arith.truncf %78 : vector<8x128xf32> to vector<8x128xbf16>
    %c7 = arith.constant 7 : index
    %c0_56 = arith.constant 0 : index
    %c0_57 = arith.constant 0 : index
    %80 = vector.load %arg4[%c7, %c0_56, %c0_57] : memref<8x128x128xbf16, #tpu.memory_space<vmem>>, vector<1x128x128xbf16>
    %81 = vector.shape_cast %80 : vector<1x128x128xbf16> to vector<128x128xbf16>
    %cst_58 = arith.constant dense<0.000000e+00> : vector<8x128xf32>
    %82 = tpu.matmul %79, %81, %cst_58 {dimension_numbers = #tpu.dot_dimension_numbers<[1], [0], [0], [1], [0, 0, 1, 1], [], []>} : vector<8x128xbf16>, vector<128x128xbf16>, vector<8x128xf32> -> vector<8x128xf32>
    %c7_59 = arith.constant 7 : index
    %c0_60 = arith.constant 0 : index
    %c0_61 = arith.constant 0 : index
    %83 = vector.load %arg5[%c7_59, %c0_60, %c0_61] : memref<8x1x128xf32, #tpu.memory_space<vmem>>, vector<1x1x128xf32>
    %84 = vector.shape_cast %83 : vector<1x1x128xf32> to vector<1x128xf32>
    %85 = vector.broadcast %84 : vector<1x128xf32> to vector<8x128xf32>
    %86 = arith.addf %82, %85 : vector<8x128xf32>
    %cst_62 = arith.constant 0.000000e+00 : f32
    %87 = vector.broadcast %cst_62 : f32 to vector<8x128xf32>
    %88 = arith.maximumf %86, %87 : vector<8x128xf32>
    %89 = arith.truncf %88 : vector<8x128xf32> to vector<8x128xbf16>
    %c0_63 = arith.constant 0 : index
    %c0_64 = arith.constant 0 : index
    %90 = vector.load %arg6[%c0_63, %c0_64] : memref<128x128xbf16, #tpu.memory_space<vmem>>, vector<128x128xbf16>
    %cst_65 = arith.constant dense<0.000000e+00> : vector<8x128xf32>
    %91 = tpu.matmul %89, %90, %cst_65 {dimension_numbers = #tpu.dot_dimension_numbers<[1], [0], [0], [1], [0, 0, 1, 1], [], []>} : vector<8x128xbf16>, vector<128x128xbf16>, vector<8x128xf32> -> vector<8x128xf32>
    %c0_66 = arith.constant 0 : index
    %c0_67 = arith.constant 0 : index
    %92 = vector.load %arg7[%c0_66, %c0_67] : memref<1x128xf32, #tpu.memory_space<vmem>>, vector<1x128xf32>
    %93 = vector.broadcast %92 : vector<1x128xf32> to vector<8x128xf32>
    %94 = arith.addf %91, %93 : vector<8x128xf32>
    %95 = vector.extract_strided_slice %94 {offsets = [0, 0], sizes = [8, 1], strides = [1, 1]} : vector<8x128xf32> to vector<8x1xf32>
    %c0_68 = arith.constant 0 : index
    %c0_69 = arith.constant 0 : index
    %96 = vector.load %arg8[%c0_68, %c0_69] : memref<8x1xf32, #tpu.memory_space<vmem>>, vector<8x1xf32>
    tpu.vector_store %arg8[%c0_68, %c0_69], %95 {strides = array<i32>} : memref<8x1xf32, #tpu.memory_space<vmem>>, vector<8x1xf32>,
    return
  }
  func.func @transform_0(%arg0: i32) -> (i32, i32) {
    %c0_i32 = arith.constant 0 : i32
    %c0_i32_0 = arith.constant 0 : i32
    return %arg0, %c0_i32 : i32, i32
  }
  func.func @transform_1(%arg0: i32) -> (i32, i32) {
    %c0_i32 = arith.constant 0 : i32
    %c0_i32_0 = arith.constant 0 : i32
    %c0_i32_1 = arith.constant 0 : i32
    return %c0_i32, %c0_i32_0 : i32, i32
  }
  func.func @transform_2(%arg0: i32) -> (i32, i32) {
    %c0_i32 = arith.constant 0 : i32
    %c0_i32_0 = arith.constant 0 : i32
    %c0_i32_1 = arith.constant 0 : i32
    return %c0_i32, %c0_i32_0 : i32, i32
  }
  func.func @transform_3(%arg0: i32) -> (i32, i32, i32) {
    %c0_i32 = arith.constant 0 : i32
    %c0_i32_0 = arith.constant 0 : i32
    %c0_i32_1 = arith.constant 0 : i32
    %c0_i32_2 = arith.constant 0 : i32
    return %c0_i32, %c0_i32_0, %c0_i32_1 : i32, i32, i32
  }
  func.func @transform_4(%arg0: i32) -> (i32, i32, i32) {
    %c0_i32 = arith.constant 0 : i32
    %c0_i32_0 = arith.constant 0 : i32
    %c0_i32_1 = arith.constant 0 : i32
    %c0_i32_2 = arith.constant 0 : i32
    return %c0_i32, %c0_i32_0, %c0_i32_1 : i32, i32, i32
  }
  func.func @transform_5(%arg0: i32) -> (i32, i32) {
    %c0_i32 = arith.constant 0 : i32
    %c0_i32_0 = arith.constant 0 : i32
    %c0_i32_1 = arith.constant 0 : i32
    return %c0_i32, %c0_i32_0 : i32, i32
  }
  func.func @transform_6(%arg0: i32) -> (i32, i32) {
    %c0_i32 = arith.constant 0 : i32
    %c0_i32_0 = arith.constant 0 : i32
    %c0_i32_1 = arith.constant 0 : i32
    return %c0_i32, %c0_i32_0 : i32, i32
  }
  func.func @transform_7(%arg0: i32) -> (i32, i32) {
    %c0_i32 = arith.constant 0 : i32
    %c0_i32_0 = arith.constant 0 : i32
    return %arg0, %c0_i32 : i32, i32
  }
}

</mosaic_0001>

<bundles_post_ra>
// kernel: tpu_custom_call.1
= control target key start
LH: loop header
LB: loop body
LE: loop exit
PB: predicated region body
PF: predicated region fallthrough
CT: control target
= control target key end

     0   :  { %12 = vsyncpa [#allocation3], 0  ;;  %s2007_s0 = inlined_call_operand.hbm [shape: f32[8,128], index: 0, kind: input, shape index: {}]   ;;  %s2008_s1 = inlined_call_operand.hbm [shape: bf16[128,128], index: 1, kind: input, shape index: {}]   ;;  %s2009_s2 = inlined_call_operand.vmem [shape: f32[1,128], index: 2, kind: input, shape index: {}]   ;;  %s2010_s3 = inlined_call_operand.hbm [shape: bf16[8,128,128], index: 3, kind: input, shape index: {}]   ;;  %s2011_s4 = inlined_call_operand.hbm [shape: f32[8,1,128], index: 4, kind: input, shape index: {}]   ;;  %s2012_s5 = inlined_call_operand.hbm [shape: bf16[128,128], index: 5, kind: input, shape index: {}]   ;;  %s2013_s6 = inlined_call_operand.vmem [shape: f32[1,128], index: 6, kind: input, shape index: {}]   ;;  %s2014_s7 = inlined_call_operand.vmem [shape: f32[8,1], index: 7, kind: output, shape index: {}]  }
   0x1   :  { %13 = vsyncpa [#allocation5], 0 }
   0x2   :  { %14 = vsyncpa [#allocation8], 0  ;;  %s1823_s24 = smov [#allocation4]  }
   0x3   :  { %s30_s25 = sshll.u32 %s1823_s24, 4  ;;  %s31_s25 = int_to_ptr.vmem [resolvable:$true] %s30_s25 }
   0x4   :  { %s1725_s26 = scalar_lea.vmem %s31_s25, 1024  ;;  %p1730_p1 = scmp.lt.s32.totalorder %s31_s25, %s31_s25 }
   0x5   :  { %p1726_p0 = scmp.ne.s32.totalorder %s31_s25, %s1725_s26  ;;  %p1731_p2 = scmp.lt.s32.totalorder %s1725_s26, %s1725_s26 }
   0x7   :  { %p1732_p3 = por %p1731_p2, %p1730_p1 }
   0x9   :  { %p1733_p4 = pnand %p1732_p3, %p1726_p0 }
   0xb   :  { %1736 = shalt.err (!%p1733_p4)
}
   0xc   :  { %s1824_s27 = smov 64   ;;  %s1825_s28 = smov 4  }
   0xd   :  { %36 = dma.hbm_to_vmem [thread:$0]  %s2008_s1, 1024, %s31_s25, [#allocation5], %s1824_s27, %s1824_s27, %s1825_s28  }
   0xe   :  { %s1826_s8 = smov [#allocation7]  }
   0xf   :  { %s56_s9 = sshll.u32 %s1826_s8, 4  ;;  %s57_s9 = int_to_ptr.vmem [resolvable:$true] %s56_s9 }
  0x10   :  { %s1745_s10 = scalar_lea.vmem %s57_s9, 128  ;;  %p1750_p6 = scmp.lt.s32.totalorder %s57_s9, %s57_s9 }
  0x11   :  { %p1746_p5 = scmp.ne.s32.totalorder %s57_s9, %s1745_s10  ;;  %p1751_p7 = scmp.lt.s32.totalorder %s1745_s10, %s1745_s10 }
  0x13   :  { %p1752_p8 = por %p1751_p7, %p1750_p6 }
  0x15   :  { %p1753_p9 = pnand %p1752_p8, %p1746_p5 }
  0x17   :  { %1756 = shalt.err (!%p1753_p9)
}
  0x18   :  { %s1827_s11 = smov 16   ;;  %s1828_s12 = smov 1  }
  0x19   :  { %62 = dma.hbm_to_vmem [thread:$0]  %s2011_s4, 128, %s57_s9, [#allocation8], %s1827_s11, %s1827_s11, %s1828_s12  }
  0x1a   :  { %s1829_s15 = smov [#allocation2]   ;;  %s1830_s17 = smov [#allocation6]  }
  0x1b   :  { %s21_s16 = sshll.u32 %s1829_s15, 4  ;;  %s44_s1 = sshll.u32 %s1830_s17, 4  ;;  %s22_s16 = int_to_ptr.vmem [resolvable:$true] %s21_s16  ;;  %s45_s1 = int_to_ptr.vmem [resolvable:$true] %s44_s1 }
  0x1c   :  { %s1765_s18 = scalar_lea.vmem %s22_s16, 128  ;;  %p1770_p11 = scmp.lt.s32.totalorder %s22_s16, %s22_s16 }
  0x1d   :  { %p1766_p10 = scmp.ne.s32.totalorder %s22_s16, %s1765_s18  ;;  %p1771_p12 = scmp.lt.s32.totalorder %s1765_s18, %s1765_s18 }
  0x1f   :  { %p1772_p13 = por %p1771_p12, %p1770_p11 }
  0x21   :  { %p1773_p0 = pnand %p1772_p13, %p1766_p10 }
  0x23   :  { %1776 = shalt.err (!%p1773_p0)
}
  0x24   :  { %24 = dma.hbm_to_vmem [thread:$0]  %s2007_s0, 128, %s22_s16, [#allocation3]  }
  0x25   :  { %s1785_s21 = scalar_lea.vmem %s45_s1, 8192  ;;  %p1790_p2 = scmp.lt.s32.totalorder %s45_s1, %s45_s1 }
  0x26   :  { %p1786_p1 = scmp.ne.s32.totalorder %s45_s1, %s1785_s21  ;;  %p1791_p3 = scmp.lt.s32.totalorder %s1785_s21, %s1785_s21 }
  0x28   :  { %p1792_p4 = por %p1791_p3, %p1790_p2 }
  0x2a   :  { %p1793_p5 = pnand %p1792_p4, %p1786_p1 }
  0x2c   :  { %1796 = shalt.err (!%p1793_p5)
}
  0x2d   :  { %50 = dma.hbm_to_vmem [thread:$0]  %s2010_s3, 8192, %s45_s1, [#allocation5], %s1824_s27, %s1824_s27, %s1825_s28  }
  0x2e   :  { %s1831_s23 = smov [#allocation9]  }
  0x2f   :  { %s68_s24 = sshll.u32 %s1831_s23, 4  ;;  %s69_s24 = int_to_ptr.vmem [resolvable:$true] %s68_s24 }
  0x30   :  { %s1805_s25 = scalar_lea.vmem %s69_s24, 1024  ;;  %p1810_p7 = scmp.lt.s32.totalorder %s69_s24, %s69_s24 }
  0x31   :  { %p1806_p6 = scmp.ne.s32.totalorder %s69_s24, %s1805_s25  ;;  %p1811_p8 = scmp.lt.s32.totalorder %s1805_s25, %s1805_s25 }
  0x33   :  { %p1812_p9 = por %p1811_p8, %p1810_p7 }
  0x35   :  { %p1813_p10 = pnand %p1812_p9, %p1806_p6 }
  0x37   :  { %1816 = shalt.err (!%p1813_p10)
}
  0x38   :  { %74 = dma.hbm_to_vmem [thread:$0]  %s2012_s5, 1024, %s69_s24, [#allocation8], %s1824_s27, %s1824_s27, %s1825_s28  }
  0x39   :  { %1817 = dma.done.wait [#allocation3], 128  }
  0x3a   :  { %1818 = vsyncadd [#allocation3], 4294967168 }
  0x3b   :  { %1819 = dma.done.wait [#allocation5], 9216  }
  0x3c   :  { %1820 = vsyncadd [#allocation5], 4294958080 }
  0x3d   :  { %1821 = dma.done.wait [#allocation8], 1152  }
  0x3e   :  { %1822 = vsyncadd [#allocation8], 4294966144  ;;  %v1832_v0 = vmov 0.0   ;;  %vm1833_vm0 = vmmov 0   ;;  %v1637_v1 = vld [vmem:[#allocation4 + $0x38] sm:$0xff]   ;;  %v1638_v2 = vld [vmem:[#allocation4 + $0x30] sm:$0xff]  }
  0x3f   :  { %1426 = vmatprep.subr.bf16.mxu0 %v1832_v0  ;;  %1442 = vmatprep.mubr.msk.bf16.mxu0 %vm1833_vm0, %v1832_v0  ;;  %v1639_v3 = vld [vmem:[#allocation4 + $0x28] sm:$0xff]   ;;  %v1645_v4 = vld [vmem:[#allocation6 + $0x38] sm:$0xff]   ;;  %v1640_v5 = vld [vmem:[#allocation4 + $0x20] sm:$0xff]   ;;  %vm1237_vm1 = vcmask 7168  }
  0x40   :  { %1446 = vmatprep.subr.bf16.mxu1 %v1832_v0  ;;  %1462 = vmatprep.mubr.msk.bf16.mxu1 %vm1833_vm0, %v1832_v0  ;;  %v1646_v6 = vld [vmem:[#allocation6 + $0x30] sm:$0xff]   ;;  %v1641_v7 = vld [vmem:[#allocation4 + $0x18] sm:$0xff]   ;;  %v1647_v8 = vld [vmem:[#allocation6 + $0x28] sm:$0xff]  }
  0x41   :  { %1427 = vmatpush3.bf16.msra.mxu0 %v1637_v1  ;;  %1447 = vmatpush3.bf16.msra.mxu1 %v1645_v4  ;;  %v1642_v9 = vld [vmem:[#allocation4 + $0x10] sm:$0xff]   ;;  %v1648_v10 = vld [vmem:[#allocation6 + $0x20] sm:$0xff]   ;;  %v1643_v11 = vld [vmem:[#allocation4 + $0x8] sm:$0xff]  }
  0x42   :  { %1428 = vmatprep.subr.bf16.mxu0 %v1832_v0  ;;  %1448 = vmatprep.subr.bf16.mxu1 %v1832_v0  ;;  %v1649_v12 = vld [vmem:[#allocation6 + $0x18] sm:$0xff]   ;;  %v1644_v13 = vld [vmem:[#allocation4] sm:$0xff]   ;;  %v1650_v15 = vld [vmem:[#allocation6 + $0x10] sm:$0xff]  }
  0x43   :  { %v93_v14 = vld [vmem:[#allocation2] sm:$0xff]  ;;  %v1651_v17 = vld [vmem:[#allocation6 + $0x8] sm:$0xff]   ;;  %v1652_v18 = vld [vmem:[#allocation6] sm:$0xff]  }
  0x44   :  { %v94_v16 = vpack.c.bf16 %v93_v14, %v93_v14  ;;  %v1653_v19 = vld [vmem:[#allocation6 + $0x78] sm:$0xff]   ;;  %v1654_v20 = vld [vmem:[#allocation6 + $0x70] sm:$0xff]   ;;  %v1655_v21 = vld [vmem:[#allocation6 + $0x68] sm:$0xff]  }
  0x45   :  { %1429 = vmatpush3.bf16.msra.mxu0 %v1638_v2  ;;  %1449 = vmatpush3.bf16.msra.mxu1 %v1646_v6  ;;  %v1656_v22 = vld [vmem:[#allocation6 + $0x60] sm:$0xff]   ;;  %v1657_v23 = vld [vmem:[#allocation6 + $0x58] sm:$0xff]   ;;  %v1658_v24 = vld [vmem:[#allocation6 + $0x50] sm:$0xff]  }
  0x46   :  { %1430 = vmatprep.subr.bf16.mxu0 %v1832_v0  ;;  %1450 = vmatprep.subr.bf16.mxu1 %v1832_v0  ;;  %v1246_v25 = vld [vmem:[%s2009_s2] ss:$0 sm:$0xff]  ;;  %v1659_v33 = vld [vmem:[#allocation6 + $0x48] sm:$0xff]   ;;  %v1660_v34 = vld [vmem:[#allocation6 + $0x40] sm:$0xff]  }
  0x47   :  { %v1661_v35 = vld [vmem:[#allocation6 + $0xb8] sm:$0xff]   ;;  %v1662_v36 = vld [vmem:[#allocation6 + $0xb0] sm:$0xff]   ;;  %v1663_v37 = vld [vmem:[#allocation6 + $0xa8] sm:$0xff]  }
  0x48   :  { %v1664_v38 = vld [vmem:[#allocation6 + $0xa0] sm:$0xff]   ;;  %v1665_v39 = vld [vmem:[#allocation6 + $0x98] sm:$0xff]   ;;  %v1666_v40 = vld [vmem:[#allocation6 + $0x90] sm:$0xff]  }
  0x49   :  { %1431 = vmatpush3.bf16.msra.mxu0 %v1639_v3  ;;  %1451 = vmatpush3.bf16.msra.mxu1 %v1647_v8  ;;  %v1255_v41 = vld [vmem:[#allocation7] ss:$0 sm:$0xff]  ;;  %v1667_v49 = vld [vmem:[#allocation6 + $0x88] sm:$0xff]   ;;  %v1669_v51 = vld [vmem:[#allocation6 + $0xf8] sm:$0xff]  }
  0x4a   :  { %1432 = vmatprep.subr.bf16.mxu0 %v1832_v0  ;;  %1452 = vmatprep.subr.bf16.mxu1 %v1832_v0  ;;  %v1668_v50 = vld [vmem:[#allocation6 + $0x80] sm:$0xff]   ;;  %v1670_v52 = vld [vmem:[#allocation6 + $0xf0] sm:$0xff]   ;;  %v1671_v53 = vld [vmem:[#allocation6 + $0xe8] sm:$0xff]  }
  0x4b   :  { %v1672_v54 = vld [vmem:[#allocation6 + $0xe0] sm:$0xff]   ;;  %v1673_v55 = vld [vmem:[#allocation6 + $0xd8] sm:$0xff]   ;;  %v1674_v56 = vld [vmem:[#allocation6 + $0xd0] sm:$0xff]  }
  0x4c   :  { %v1264_v57 = vld [vmem:[#allocation7 + $0x1] ss:$0 sm:$0xff]  ;;  %v1675_v2 = vld [vmem:[#allocation6 + $0xc8] sm:$0xff]   ;;  %v1677_v4 = vld [vmem:[#allocation6 + $0x138] sm:$0xff]  }
  0x4d   :  { %1433 = vmatpush3.bf16.msra.mxu0 %v1640_v5  ;;  %1453 = vmatpush3.bf16.msra.mxu1 %v1648_v10  ;;  %v1676_v3 = vld [vmem:[#allocation6 + $0xc0] sm:$0xff]   ;;  %v1678_v5 = vld [vmem:[#allocation6 + $0x130] sm:$0xff]   ;;  %v1679_v6 = vld [vmem:[#allocation6 + $0x128] sm:$0xff]  }
  0x4e   :  { %1434 = vmatprep.subr.bf16.mxu0 %v1832_v0  ;;  %1454 = vmatprep.subr.bf16.mxu1 %v1832_v0  ;;  %v1681_v8 = vld [vmem:[#allocation6 + $0x118] sm:$0xff]   ;;  %v1273_v10 = vld [vmem:[#allocation7 + $0x2] ss:$0 sm:$0xff] }
  0x51   :  { %1435 = vmatpush3.bf16.msra.mxu0 %v1641_v7  ;;  %1455 = vmatpush3.bf16.msra.mxu1 %v1649_v12  ;;  %v1680_v7 = vld [vmem:[#allocation6 + $0x120] sm:$0xff]  }
  0x52   :  { %1436 = vmatprep.subr.bf16.mxu0 %v1832_v0  ;;  %1456 = vmatprep.subr.bf16.mxu1 %v1832_v0 }
  0x55   :  { %1437 = vmatpush3.bf16.msra.mxu0 %v1642_v9  ;;  %1457 = vmatpush3.bf16.msra.mxu1 %v1650_v15  ;;  %v1682_v9 = vld [vmem:[#allocation6 + $0x110] sm:$0xff]  }
  0x56   :  { %1438 = vmatprep.subr.bf16.mxu0 %v1832_v0  ;;  %1458 = vmatprep.subr.bf16.mxu1 %v1832_v0 }
  0x59   :  { %1439 = vmatpush3.bf16.msra.mxu0 %v1643_v11  ;;  %1459 = vmatpush3.bf16.msra.mxu1 %v1651_v17 }
  0x5a   :  { %1440 = vmatprep.subr.bf16.mxu0 %v1832_v0  ;;  %1460 = vmatprep.subr.bf16.mxu1 %v1832_v0 }
  0x5d   :  { %1441 = vmatpush3.bf16.msra.mxu0 %v1644_v13  ;;  %1461 = vmatpush3.bf16.msra.mxu1 %v1652_v18  ;;  %v1683_v18 = vld [vmem:[#allocation6 + $0x108] sm:$0xff]  }
  0x5e   :  { %1466 = vmatprep.subr.bf16.mxu0 %v1832_v0  ;;  %1486 = vmatprep.subr.bf16.mxu1 %v1832_v0 }
  0x60   :  { %1443 = vmatmul.mubr.bf16.vlgmr.msra.gmra.mxu0 %v94_v16 }
  0x61   :  { %1482 = vmatprep.mubr.msk.bf16.mxu0 %vm1833_vm0, %v1832_v0  ;;  %1467 = vmatpush3.bf16.msra.mxu0 %v1653_v19  ;;  %v1684_v19 = vld [vmem:[#allocation6 + $0x100] sm:$0xff]  }
  0x62   :  { %1468 = vmatprep.subr.bf16.mxu0 %v1832_v0 }
  0x65   :  { %1469 = vmatpush3.bf16.msra.mxu0 %v1654_v20  ;;  %v1685_v20 = vld [vmem:[#allocation6 + $0x178] sm:$0xff]  }
  0x66   :  { %1470 = vmatprep.subr.bf16.mxu0 %v1832_v0 }
  0x69   :  { %1471 = vmatpush3.bf16.msra.mxu0 %v1655_v21  ;;  %v1686_v21 = vld [vmem:[#allocation6 + $0x170] sm:$0xff]  }
  0x6a   :  { %1472 = vmatprep.subr.bf16.mxu0 %v1832_v0 }
  0x6d   :  { %1473 = vmatpush3.bf16.msra.mxu0 %v1656_v22  ;;  %v1687_v22 = vld [vmem:[#allocation6 + $0x168] sm:$0xff]  }
  0x6e   :  { %1474 = vmatprep.subr.bf16.mxu0 %v1832_v0 }
  0x71   :  { %1475 = vmatpush3.bf16.msra.mxu0 %v1657_v23  ;;  %v1688_v23 = vld [vmem:[#allocation6 + $0x160] sm:$0xff]  }
  0x72   :  { %1476 = vmatprep.subr.bf16.mxu0 %v1832_v0 }
  0x75   :  { %1477 = vmatpush3.bf16.msra.mxu0 %v1658_v24  ;;  %v1689_v24 = vld [vmem:[#allocation6 + $0x158] sm:$0xff]  }
  0x76   :  { %1478 = vmatprep.subr.bf16.mxu0 %v1832_v0 }
  0x79   :  { %1479 = vmatpush3.bf16.msra.mxu0 %v1659_v33 }
  0x7a   :  { %1480 = vmatprep.subr.bf16.mxu0 %v1832_v0 }
  0x7d   :  { %1481 = vmatpush3.bf16.msra.mxu0 %v1660_v34  ;;  %v1691_v34 = vld [vmem:[#allocation6 + $0x148] sm:$0xff]  }
  0x7e   :  { %1506 = vmatprep.subr.bf16.mxu0 %v1832_v0 }
 0x120   :  { %v200_v26 = vpop.f32.mrf.mxu0 }
 0x121   :  { %v201_v27 = vadd.f32 %v1246_v25, %v200_v26  ;;  %v1690_v25 = vld [vmem:[#allocation6 + $0x150] sm:$0xff]   ;;  %v1282_v26 = vld [vmem:[#allocation7 + $0x3] ss:$0 sm:$0xff] }
 0x122   :  { %v1444_v28 = vpop.f32.mrf.mxu0 }
 0x123   :  { %v206_v29 = vmax.f32 %v201_v27, 0.0 }
 0x124   :  { %v203_v30 = vpop.f32.mrf.mxu0 }
 0x125   :  { %v207_v31 = vpack.c.bf16 %v206_v29, %v206_v29 }
 0x126   :  { %v1445_v32 = vpop.f32.mrf.mxu0 }
 0x127   :  { %1463 = vmatmul.mubr.bf16.vlgmr.msra.gmra.mxu1 %v207_v31 }
 0x128   :  { %1502 = vmatprep.mubr.msk.bf16.mxu1 %vm1833_vm0, %v1832_v0  ;;  %1487 = vmatpush3.bf16.msra.mxu1 %v1661_v35  ;;  %v1692_v35 = vld [vmem:[#allocation6 + $0x140] sm:$0xff]  }
 0x129   :  { %1488 = vmatprep.subr.bf16.mxu1 %v1832_v0 }
 0x12c   :  { %1489 = vmatpush3.bf16.msra.mxu1 %v1662_v36  ;;  %v1693_v36 = vld [vmem:[#allocation6 + $0x1b8] sm:$0xff]  }
 0x12d   :  { %1490 = vmatprep.subr.bf16.mxu1 %v1832_v0 }
 0x130   :  { %1491 = vmatpush3.bf16.msra.mxu1 %v1663_v37  ;;  %v1694_v37 = vld [vmem:[#allocation6 + $0x1b0] sm:$0xff]  }
 0x131   :  { %1492 = vmatprep.subr.bf16.mxu1 %v1832_v0 }
 0x134   :  { %1493 = vmatpush3.bf16.msra.mxu1 %v1664_v38  ;;  %v1695_v38 = vld [vmem:[#allocation6 + $0x1a8] sm:$0xff]  }
 0x135   :  { %1494 = vmatprep.subr.bf16.mxu1 %v1832_v0 }
 0x138   :  { %1495 = vmatpush3.bf16.msra.mxu1 %v1665_v39  ;;  %v1696_v39 = vld [vmem:[#allocation6 + $0x1a0] sm:$0xff]  }
 0x139   :  { %1496 = vmatprep.subr.bf16.mxu1 %v1832_v0 }
 0x13c   :  { %1497 = vmatpush3.bf16.msra.mxu1 %v1666_v40  ;;  %v1697_v40 = vld [vmem:[#allocation6 + $0x198] sm:$0xff]  }
 0x13d   :  { %1498 = vmatprep.subr.bf16.mxu1 %v1832_v0 }
 0x140   :  { %1499 = vmatpush3.bf16.msra.mxu1 %v1667_v49 }
 0x141   :  { %1500 = vmatprep.subr.bf16.mxu1 %v1832_v0 }
 0x144   :  { %1501 = vmatpush3.bf16.msra.mxu1 %v1668_v50  ;;  %v1699_v50 = vld [vmem:[#allocation6 + $0x188] sm:$0xff]  }
 0x145   :  { %1526 = vmatprep.subr.bf16.mxu1 %v1832_v0 }
 0x1e7   :  { %v313_v42 = vpop.f32.mrf.mxu1 }
 0x1e8   :  { %v314_v43 = vadd.f32 %v1255_v41, %v313_v42  ;;  %v1698_v41 = vld [vmem:[#allocation6 + $0x190] sm:$0xff]   ;;  %v1291_v42 = vld [vmem:[#allocation7 + $0x4] ss:$0 sm:$0xff] }
 0x1e9   :  { %v1464_v44 = vpop.f32.mrf.mxu1 }
 0x1ea   :  { %v319_v45 = vmax.f32 %v314_v43, 0.0 }
 0x1eb   :  { %v316_v46 = vpop.f32.mrf.mxu1 }
 0x1ec   :  { %v320_v47 = vpack.c.bf16 %v319_v45, %v319_v45 }
 0x1ed   :  { %v1465_v48 = vpop.f32.mrf.mxu1 }
 0x1ee   :  { %1483 = vmatmul.mubr.bf16.vlgmr.msra.gmra.mxu0 %v320_v47 }
 0x1ef   :  { %1522 = vmatprep.mubr.msk.bf16.mxu0 %vm1833_vm0, %v1832_v0  ;;  %1507 = vmatpush3.bf16.msra.mxu0 %v1669_v51  ;;  %v1700_v51 = vld [vmem:[#allocation6 + $0x180] sm:$0xff]  }
 0x1f0   :  { %1508 = vmatprep.subr.bf16.mxu0 %v1832_v0 }
 0x1f3   :  { %1509 = vmatpush3.bf16.msra.mxu0 %v1670_v52  ;;  %v1701_v52 = vld [vmem:[#allocation6 + $0x1f8] sm:$0xff]  }
 0x1f4   :  { %1510 = vmatprep.subr.bf16.mxu0 %v1832_v0 }
 0x1f7   :  { %1511 = vmatpush3.bf16.msra.mxu0 %v1671_v53  ;;  %v1702_v53 = vld [vmem:[#allocation6 + $0x1f0] sm:$0xff]  }
 0x1f8   :  { %1512 = vmatprep.subr.bf16.mxu0 %v1832_v0 }
 0x1fb   :  { %1513 = vmatpush3.bf16.msra.mxu0 %v1672_v54  ;;  %v1703_v54 = vld [vmem:[#allocation6 + $0x1e8] sm:$0xff]  }
 0x1fc   :  { %1514 = vmatprep.subr.bf16.mxu0 %v1832_v0 }
 0x1ff   :  { %1515 = vmatpush3.bf16.msra.mxu0 %v1673_v55  ;;  %v1704_v55 = vld [vmem:[#allocation6 + $0x1e0] sm:$0xff]  }
 0x200   :  { %1516 = vmatprep.subr.bf16.mxu0 %v1832_v0 }
 0x203   :  { %1517 = vmatpush3.bf16.msra.mxu0 %v1674_v56  ;;  %v1705_v56 = vld [vmem:[#allocation6 + $0x1d8] sm:$0xff]  }
 0x204   :  { %1518 = vmatprep.subr.bf16.mxu0 %v1832_v0 }
 0x207   :  { %1519 = vmatpush3.bf16.msra.mxu0 %v1675_v2 }
 0x208   :  { %1520 = vmatprep.subr.bf16.mxu0 %v1832_v0 }
 0x20b   :  { %1521 = vmatpush3.bf16.msra.mxu0 %v1676_v3  ;;  %v1707_v3 = vld [vmem:[#allocation6 + $0x1c8] sm:$0xff]  }
 0x20c   :  { %1546 = vmatprep.subr.bf16.mxu0 %v1832_v0 }
 0x2ae   :  { %v428_v58 = vpop.f32.mrf.mxu0 }
 0x2af   :  { %v429_v59 = vadd.f32 %v1264_v57, %v428_v58  ;;  %v1706_v57 = vld [vmem:[#allocation6 + $0x1d0] sm:$0xff]   ;;  %v1300_v58 = vld [vmem:[#allocation7 + $0x5] ss:$0 sm:$0xff] }
 0x2b0   :  { %v1484_v60 = vpop.f32.mrf.mxu0 }
 0x2b1   :  { %v434_v61 = vmax.f32 %v429_v59, 0.0 }
 0x2b2   :  { %v431_v62 = vpop.f32.mrf.mxu0 }
 0x2b3   :  { %v435_v63 = vpack.c.bf16 %v434_v61, %v434_v61 }
 0x2b4   :  { %v1485_v1 = vpop.f32.mrf.mxu0 }
 0x2b5   :  { %1503 = vmatmul.mubr.bf16.vlgmr.msra.gmra.mxu1 %v435_v63 }
 0x2b6   :  { %1542 = vmatprep.mubr.msk.bf16.mxu1 %vm1833_vm0, %v1832_v0  ;;  %1527 = vmatpush3.bf16.msra.mxu1 %v1677_v4  ;;  %v1708_v4 = vld [vmem:[#allocation6 + $0x1c0] sm:$0xff]  }
 0x2b7   :  { %1528 = vmatprep.subr.bf16.mxu1 %v1832_v0 }
 0x2ba   :  { %1529 = vmatpush3.bf16.msra.mxu1 %v1678_v5  ;;  %v1709_v5 = vld [vmem:[#allocation9 + $0x38] sm:$0xff]  }
 0x2bb   :  { %1530 = vmatprep.subr.bf16.mxu1 %v1832_v0 }
 0x2be   :  { %1531 = vmatpush3.bf16.msra.mxu1 %v1679_v6  ;;  %v1710_v6 = vld [vmem:[#allocation9 + $0x30] sm:$0xff]  }
 0x2bf   :  { %1532 = vmatprep.subr.bf16.mxu1 %v1832_v0 }
 0x2c2   :  { %1533 = vmatpush3.bf16.msra.mxu1 %v1680_v7  ;;  %v1711_v7 = vld [vmem:[#allocation9 + $0x28] sm:$0xff]  }
 0x2c3   :  { %1534 = vmatprep.subr.bf16.mxu1 %v1832_v0 }
 0x2c6   :  { %1535 = vmatpush3.bf16.msra.mxu1 %v1681_v8  ;;  %v1712_v8 = vld [vmem:[#allocation9 + $0x20] sm:$0xff]  }
 0x2c7   :  { %1536 = vmatprep.subr.bf16.mxu1 %v1832_v0 }
 0x2ca   :  { %1537 = vmatpush3.bf16.msra.mxu1 %v1682_v9  ;;  %v1713_v9 = vld [vmem:[#allocation9 + $0x18] sm:$0xff]  }
 0x2cb   :  { %1538 = vmatprep.subr.bf16.mxu1 %v1832_v0 }
 0x2ce   :  { %1539 = vmatpush3.bf16.msra.mxu1 %v1683_v18 }
 0x2cf   :  { %1540 = vmatprep.subr.bf16.mxu1 %v1832_v0 }
 0x2d2   :  { %1541 = vmatpush3.bf16.msra.mxu1 %v1684_v19  ;;  %v1715_v19 = vld [vmem:[#allocation9 + $0x8] sm:$0xff]  }
 0x2d3   :  { %1566 = vmatprep.subr.bf16.mxu1 %v1832_v0 }
 0x375   :  { %v543_v11 = vpop.f32.mrf.mxu1 }
 0x376   :  { %v544_v12 = vadd.f32 %v1273_v10, %v543_v11  ;;  %v1714_v10 = vld [vmem:[#allocation9 + $0x10] sm:$0xff]   ;;  %v1309_v11 = vld [vmem:[#allocation7 + $0x6] ss:$0 sm:$0xff] }
 0x377   :  { %v1504_v13 = vpop.f32.mrf.mxu1 }
 0x378   :  { %v549_v14 = vmax.f32 %v544_v12, 0.0 }
 0x379   :  { %v546_v15 = vpop.f32.mrf.mxu1 }
 0x37a   :  { %v550_v16 = vpack.c.bf16 %v549_v14, %v549_v14 }
 0x37b   :  { %v1505_v17 = vpop.f32.mrf.mxu1 }
 0x37c   :  { %1523 = vmatmul.mubr.bf16.vlgmr.msra.gmra.mxu0 %v550_v16 }
 0x37d   :  { %1562 = vmatprep.mubr.msk.bf16.mxu0 %vm1833_vm0, %v1832_v0  ;;  %1547 = vmatpush3.bf16.msra.mxu0 %v1685_v20  ;;  %v1716_v20 = vld [vmem:[#allocation9] sm:$0xff]  }
 0x37e   :  { %1548 = vmatprep.subr.bf16.mxu0 %v1832_v0 }
 0x381   :  { %1549 = vmatpush3.bf16.msra.mxu0 %v1686_v21  ;;  %v1318_v21 = vld [vmem:[#allocation7 + $0x7] ss:$0 sm:$0xff] }
 0x382   :  { %1550 = vmatprep.subr.bf16.mxu0 %v1832_v0 }
 0x385   :  { %1551 = vmatpush3.bf16.msra.mxu0 %v1687_v22 }
 0x386   :  { %1552 = vmatprep.subr.bf16.mxu0 %v1832_v0 }
 0x389   :  { %1553 = vmatpush3.bf16.msra.mxu0 %v1688_v23 }
 0x38a   :  { %1554 = vmatprep.subr.bf16.mxu0 %v1832_v0 }
 0x38d   :  { %1555 = vmatpush3.bf16.msra.mxu0 %v1689_v24 }
 0x38e   :  { %1556 = vmatprep.subr.bf16.mxu0 %v1832_v0 }
 0x391   :  { %1557 = vmatpush3.bf16.msra.mxu0 %v1690_v25 }
 0x392   :  { %1558 = vmatprep.subr.bf16.mxu0 %v1832_v0 }
 0x395   :  { %1559 = vmatpush3.bf16.msra.mxu0 %v1691_v34 }
 0x396   :  { %1560 = vmatprep.subr.bf16.mxu0 %v1832_v0 }
 0x399   :  { %1561 = vmatpush3.bf16.msra.mxu0 %v1692_v35 }
 0x39a   :  { %1586 = vmatprep.subr.bf16.mxu0 %v1832_v0 }
 0x43c   :  { %v658_v27 = vpop.f32.mrf.mxu0 }
 0x43d   :  { %v659_v28 = vadd.f32 %v1282_v26, %v658_v27 }
 0x43e   :  { %v1524_v29 = vpop.f32.mrf.mxu0 }
 0x43f   :  { %v664_v30 = vmax.f32 %v659_v28, 0.0  ;;  %v1327_v29 = vld [vmem:[%s2013_s6] ss:$0 sm:$0xff] }
 0x440   :  { %v661_v31 = vpop.f32.mrf.mxu0 }
 0x441   :  { %v665_v32 = vpack.c.bf16 %v664_v30, %v664_v30 }
 0x442   :  { %v1525_v33 = vpop.f32.mrf.mxu0 }
 0x443   :  { %1543 = vmatmul.mubr.bf16.vlgmr.msra.gmra.mxu1 %v665_v32 }
 0x444   :  { %1582 = vmatprep.mubr.msk.bf16.mxu1 %vm1833_vm0, %v1832_v0  ;;  %1567 = vmatpush3.bf16.msra.mxu1 %v1693_v36 }
 0x445   :  { %1568 = vmatprep.subr.bf16.mxu1 %v1832_v0 }
 0x448   :  { %1569 = vmatpush3.bf16.msra.mxu1 %v1694_v37 }
 0x449   :  { %1570 = vmatprep.subr.bf16.mxu1 %v1832_v0 }
 0x44c   :  { %1571 = vmatpush3.bf16.msra.mxu1 %v1695_v38 }
 0x44d   :  { %1572 = vmatprep.subr.bf16.mxu1 %v1832_v0 }
 0x450   :  { %1573 = vmatpush3.bf16.msra.mxu1 %v1696_v39 }
 0x451   :  { %1574 = vmatprep.subr.bf16.mxu1 %v1832_v0 }
 0x454   :  { %1575 = vmatpush3.bf16.msra.mxu1 %v1697_v40 }
 0x455   :  { %1576 = vmatprep.subr.bf16.mxu1 %v1832_v0 }
 0x458   :  { %1577 = vmatpush3.bf16.msra.mxu1 %v1698_v41 }
 0x459   :  { %1578 = vmatprep.subr.bf16.mxu1 %v1832_v0 }
 0x45c   :  { %1579 = vmatpush3.bf16.msra.mxu1 %v1699_v50 }
 0x45d   :  { %1580 = vmatprep.subr.bf16.mxu1 %v1832_v0 }
 0x460   :  { %1581 = vmatpush3.bf16.msra.mxu1 %v1700_v51 }
 0x461   :  { %1606 = vmatprep.subr.bf16.mxu1 %v1832_v0 }
 0x503   :  { %v773_v43 = vpop.f32.mrf.mxu1 }
 0x504   :  { %v774_v44 = vadd.f32 %v1291_v42, %v773_v43 }
 0x505   :  { %v1544_v45 = vpop.f32.mrf.mxu1 }
 0x506   :  { %v779_v46 = vmax.f32 %v774_v44, 0.0 }
 0x507   :  { %v776_v47 = vpop.f32.mrf.mxu1 }
 0x508   :  { %v780_v48 = vpack.c.bf16 %v779_v46, %v779_v46 }
 0x509   :  { %v1545_v49 = vpop.f32.mrf.mxu1 }
 0x50a   :  { %1563 = vmatmul.mubr.bf16.vlgmr.msra.gmra.mxu0 %v780_v48 }
 0x50b   :  { %1602 = vmatprep.mubr.msk.bf16.mxu0 %vm1833_vm0, %v1832_v0  ;;  %1587 = vmatpush3.bf16.msra.mxu0 %v1701_v52 }
 0x50c   :  { %1588 = vmatprep.subr.bf16.mxu0 %v1832_v0 }
 0x50f   :  { %1589 = vmatpush3.bf16.msra.mxu0 %v1702_v53 }
 0x510   :  { %1590 = vmatprep.subr.bf16.mxu0 %v1832_v0 }
 0x513   :  { %1591 = vmatpush3.bf16.msra.mxu0 %v1703_v54 }
 0x514   :  { %1592 = vmatprep.subr.bf16.mxu0 %v1832_v0 }
 0x517   :  { %1593 = vmatpush3.bf16.msra.mxu0 %v1704_v55 }
 0x518   :  { %1594 = vmatprep.subr.bf16.mxu0 %v1832_v0 }
 0x51b   :  { %1595 = vmatpush3.bf16.msra.mxu0 %v1705_v56 }
 0x51c   :  { %1596 = vmatprep.subr.bf16.mxu0 %v1832_v0 }
 0x51f   :  { %1597 = vmatpush3.bf16.msra.mxu0 %v1706_v57 }
 0x520   :  { %1598 = vmatprep.subr.bf16.mxu0 %v1832_v0 }
 0x523   :  { %1599 = vmatpush3.bf16.msra.mxu0 %v1707_v3 }
 0x524   :  { %1600 = vmatprep.subr.bf16.mxu0 %v1832_v0 }
 0x527   :  { %1601 = vmatpush3.bf16.msra.mxu0 %v1708_v4 }
 0x5ca   :  { %v888_v59 = vpop.f32.mrf.mxu0 }
 0x5cb   :  { %v889_v60 = vadd.f32 %v1300_v58, %v888_v59 }
 0x5cc   :  { %v1564_v61 = vpop.f32.mrf.mxu0 }
 0x5cd   :  { %v894_v62 = vmax.f32 %v889_v60, 0.0 }
 0x5ce   :  { %v891_v63 = vpop.f32.mrf.mxu0 }
 0x5cf   :  { %v895_v1 = vpack.c.bf16 %v894_v62, %v894_v62 }
 0x5d0   :  { %v1565_v2 = vpop.f32.mrf.mxu0 }
 0x5d1   :  { %1583 = vmatmul.mubr.bf16.vlgmr.msra.gmra.mxu1 %v895_v1 }
 0x5d2   :  { %1622 = vmatprep.mubr.msk.bf16.mxu1 %vm1833_vm0, %v1832_v0  ;;  %1607 = vmatpush3.bf16.msra.mxu1 %v1709_v5 }
 0x5d3   :  { %1608 = vmatprep.subr.bf16.mxu1 %v1832_v0 }
 0x5d6   :  { %1609 = vmatpush3.bf16.msra.mxu1 %v1710_v6 }
 0x5d7   :  { %1610 = vmatprep.subr.bf16.mxu1 %v1832_v0 }
 0x5da   :  { %1611 = vmatpush3.bf16.msra.mxu1 %v1711_v7 }
 0x5db   :  { %1612 = vmatprep.subr.bf16.mxu1 %v1832_v0 }
 0x5de   :  { %1613 = vmatpush3.bf16.msra.mxu1 %v1712_v8 }
 0x5df   :  { %1614 = vmatprep.subr.bf16.mxu1 %v1832_v0 }
 0x5e2   :  { %1615 = vmatpush3.bf16.msra.mxu1 %v1713_v9 }
 0x5e3   :  { %1616 = vmatprep.subr.bf16.mxu1 %v1832_v0 }
 0x5e6   :  { %1617 = vmatpush3.bf16.msra.mxu1 %v1714_v10 }
 0x5e7   :  { %1618 = vmatprep.subr.bf16.mxu1 %v1832_v0 }
 0x5ea   :  { %1619 = vmatpush3.bf16.msra.mxu1 %v1715_v19 }
 0x5eb   :  { %1620 = vmatprep.subr.bf16.mxu1 %v1832_v0 }
 0x5ee   :  { %1621 = vmatpush3.bf16.msra.mxu1 %v1716_v20 }
 0x691   :  { %v1003_v12 = vpop.f32.mrf.mxu1 }
 0x692   :  { %v1004_v13 = vadd.f32 %v1309_v11, %v1003_v12 }
 0x693   :  { %v1584_v14 = vpop.f32.mrf.mxu1 }
 0x694   :  { %v1009_v15 = vmax.f32 %v1004_v13, 0.0 }
 0x695   :  { %v1006_v16 = vpop.f32.mrf.mxu1 }
 0x696   :  { %v1010_v17 = vpack.c.bf16 %v1009_v15, %v1009_v15 }
 0x697   :  { %v1585_v18 = vpop.f32.mrf.mxu1 }
 0x698   :  { %1603 = vmatmul.mubr.bf16.vlgmr.msra.gmra.mxu0 %v1010_v17 }
 0x758   :  { %v1118_v22 = vpop.f32.mrf.mxu0 }
 0x759   :  { %v1119_v23 = vadd.f32 %v1318_v21, %v1118_v22 }
 0x75a   :  { %v1604_v24 = vpop.f32.mrf.mxu0 }
 0x75b   :  { %v1124_v25 = vmax.f32 %v1119_v23, 0.0 }
 0x75c   :  { %v1121_v26 = vpop.f32.mrf.mxu0 }
 0x75d   :  { %v1125_v27 = vpack.c.bf16 %v1124_v25, %v1124_v25 }
 0x75e   :  { %v1605_v28 = vpop.f32.mrf.mxu0 }
 0x75f   :  { %1623 = vmatmul.mubr.bf16.vlgmr.msra.gmra.mxu1 %v1125_v27 }
 0x81f   :  { %v1231_v30 = vpop.f32.mrf.mxu1 }
 0x820   :  { %v1232_v31 = vadd.f32 %v1327_v29, %v1231_v30 }
 0x821   :  { %v1624_v32 = vpop.f32.mrf.mxu1 }
 0x822   :  { %1238 = vst.msk [vmem:[%s2014_s7] sm:$0xff] %vm1237_vm1, %v1232_v31 }
 0x823   :  { %v1234_v0 = vpop.f32.mrf.mxu1 }
 0x825   :  { %v1625_v33 = vpop.f32.mrf.mxu1 }
 0x826   :  { %1243 = vsyncpa [#allocation3], 1 }
 0x827   :  { %1244 = vsyncpa [#allocation5], 1 }
 0x828   :  { %1245 = vsyncpa [#allocation8], 1 }

</bundles_post_ra>
